<compile_context>
chip_gen: v7x
topology: tpu7x:2x2x1
jax: 0.10.0
libtpu: 0.0.40
codegen_flags: <defaults>
</compile_context>

<pallas_src>
import functools

import jax
import jax.numpy as jnp
from jax import lax
from jax.experimental import pallas as pl
from jax.experimental.pallas import tpu as pltpu


def _round_up(n, m):
    return ((n + m - 1) // m) * m


def _cdiv(a, b):
    return (a + b - 1) // b


# ----------------------------------------------------------------------------- kernel
def _heatmap_kernel(x_ref, w_ref, lin_ref, res_ref, stat_ref, *,
                    two_over_scale, inv_two_std2, nb0):
    # pose logits for this row block, upcast in-kernel (no host-side astype pass)
    x = x_ref[...].astype(jnp.float32)                       # [TR, Fin]

    # numerically-stable softmax numerator
    m = jnp.max(x, axis=-1, keepdims=True)                   # XLU row max
    e = jnp.exp(x - m)                                       # EUP, values in (0, 1]

    # Fused reductions on the MXU: one matmul against a constant [Fin, 128] weight with
    # lanes {0: grid_w, 1: grid_h, 2: ones, 3..: zeros}.  exp tile is split into an exact
    # bf16 hi/lo pair so the f32 accuracy does not depend on default f32-matmul precision.
    e_hi = e.astype(jnp.bfloat16)
    e_lo = (e - e_hi.astype(jnp.float32)).astype(jnp.bfloat16)
    w = w_ref[...]                                            # [Fin, 128] bf16 (exact values)
    dots = (jnp.dot(e_hi, w, preferred_element_type=jnp.float32)
            + jnp.dot(e_lo, w, preferred_element_type=jnp.float32))  # [TR, 128]

    # exact normalisation (review: the approx reciprocal here was pointless and inaccurate)
    inv_s = 1.0 / dots[:, 2:3]                                # [TR, 1], s >= 1

    # lanes are already aligned with the packed stats layout: 0 -> y_mean, 1 -> x_mean
    stat_all = dots * (two_over_scale * inv_s) - 1.0          # [TR, 128]
    y_mean = stat_all[:, 0:1]                                 # 2*E[w]/scale - 1
    x_mean = stat_all[:, 1:2]                                 # 2*E[h]/scale - 1

    # gaussian heatmap on the linspace(-1, 1, out_h/out_w) grid
    lin = lin_ref[...]                                        # [2, Fout]
    lin_h = lin[0:1, :]                                       # x_ind (out_h linspace)
    lin_w = lin[1:2, :]                                       # y_ind (out_w linspace)
    dist = (lin_h - x_mean) ** 2 + (lin_w - y_mean) ** 2      # [TR, Fout]
    res = jnp.exp(-jnp.sqrt(dist + 1e-6) * inv_two_std2)
    res_ref[...] = res.astype(res_ref.dtype)

    # packed lane-dense stats: col0 = y_mean, col1 = x_mean, col2 = row-max of res.
    # The row-max is only consumed for batch-0 rows, so only the first nb0 blocks pay for it.
    col = lax.broadcasted_iota(jnp.int32, stat_ref.shape, 1)
    base = jnp.where(col < 2, stat_all, 0.0)

    @pl.when(pl.program_id(0) < nb0)
    def _():
        mx = jnp.max(res, axis=-1, keepdims=True)
        stat_ref[...] = jnp.where(col == 2, mx, base)

    @pl.when(pl.program_id(0) >= nb0)
    def _():
        stat_ref[...] = base


# ----------------------------------------------------------------------------- wrapper
def heatmap_forward(x, *, std, output_size, scale=16, res_dtype=jnp.float32):
    """HeatMap.forward. x: [B, C, H, W] with H == W == 16 (hard-coded by xy_outputs).

    Returns (res [B, C, out_h, out_w], coord [B, C, 2], max_val [C]).
    Set res_dtype=jnp.bfloat16 to halve the dominant store if downstream tolerates it.
    """
    B, C, H, W = x.shape
    out_h, out_w = output_size
    assert H == scale and W == scale, "xy_outputs hard-codes a scale x scale (16x16) grid"
    Fin, Fout = H * W, out_h * out_w
    STAT_W = 128                                              # lane-dense stats width
    R = B * C

    # VMEM-budgeted row tile; aim for >= 2 blocks so the "parallel" axis can use both
    # v7x TensorCores.  Per-block footprint ~ 2 buffers x TR x (Fin + Fout + 128) words.
    in_bytes = x.dtype.itemsize
    res_bytes = jnp.dtype(res_dtype).itemsize
    per_row = 2 * (Fin * in_bytes + Fout * res_bytes + STAT_W * 4)
    budget = 24 * 1024 * 1024
    tr_cap = max(8, (budget // per_row) // 8 * 8)
    TR = max(8, min(512, tr_cap, _round_up(_cdiv(R, 2), 8)))

    xr = x.reshape(R, Fin)                                    # no host-side pad / cast
    R_pad = TR - R if R < TR else 0                           # only when B*C < 8 (negligible)
    if R_pad:
        xr = jnp.pad(xr, ((0, R_pad), (0, 0)))
    Rrows = R + R_pad
    nblk = _cdiv(Rrows, TR)
    nb0 = min(nblk, _cdiv(C, TR))                             # leading blocks with batch-0 rows

    # constant MXU weight: lanes {0: grid_w (w index), 1: grid_h (h index), 2: ones};
    # all entries (0..15, 1, 0) are exactly representable in bf16.
    f_in = jnp.arange(Fin)
    wmat = jnp.zeros((Fin, STAT_W), jnp.float32)
    wmat = wmat.at[:, 0].set((f_in % W).astype(jnp.float32))
    wmat = wmat.at[:, 1].set((f_in // W).astype(jnp.float32))
    wmat = wmat.at[:, 2].set(1.0)
    wmat = wmat.astype(jnp.bfloat16)

    # flattened output grids: row0 = linspace over out_h (pairs with x_mean),
    #                         row1 = linspace over out_w (pairs with y_mean)
    f_out = jnp.arange(Fout)
    lin = jnp.stack(
        [jnp.linspace(-1.0, 1.0, out_h, dtype=jnp.float32)[f_out // out_w],
         jnp.linspace(-1.0, 1.0, out_w, dtype=jnp.float32)[f_out % out_w]], axis=0)

    kernel = functools.partial(
        _heatmap_kernel,
        two_over_scale=2.0 / float(scale),
        inv_two_std2=float(1.0 / (2.0 * std * std)),
        nb0=int(nb0))

    res, stat = pl.pallas_call(
        kernel,
        out_shape=(jax.ShapeDtypeStruct((Rrows, Fout), res_dtype),
                   jax.ShapeDtypeStruct((Rrows, STAT_W), jnp.float32)),
        grid_spec=pltpu.PrefetchScalarGridSpec(
            num_scalar_prefetch=0,
            grid=(nblk,),
            in_specs=[pl.BlockSpec((TR, Fin), lambda i: (i, 0)),
                      pl.BlockSpec((Fin, STAT_W), lambda i: (0, 0)),
                      pl.BlockSpec((2, Fout), lambda i: (0, 0))],
            out_specs=(pl.BlockSpec((TR, Fout), lambda i: (i, 0)),
                       pl.BlockSpec((TR, STAT_W), lambda i: (i, 0))),
        ),
        compiler_params=pltpu.CompilerParams(
            dimension_semantics=("parallel",),
            vmem_limit_bytes=32 * 1024 * 1024),
    )(xr, wmat, lin)

    if R_pad:
        res, stat = res[:R], stat[:R]
    res = res.reshape(B, C, out_h, out_w)
    coord = stat[:, 0:2].reshape(B, C, 2)                     # torch.stack([y_mean, x_mean], dim=2)
    max_val = stat[:C, 2]                                     # amax(res[0], dim=(1, 2))
    return res, coord, max_val


# ----------------------------------------------------------------------------- pure-JAX reference
def _heatmap_ref(x, *, std, out_h, out_w, scale=16):
    B, C, H, W = x.shape
    p = jax.nn.softmax(x.reshape(B, C, -1), axis=-1).reshape(B, C, H, W)
    gh = jnp.arange(scale, dtype=jnp.float32)[None, None, :, None]
    gw = jnp.arange(scale, dtype=jnp.float32)[None, None, None, :]
    x_dots = jnp.sum(p * gh, axis=(2, 3))
    y_dots = jnp.sum(p * gw, axis=(2, 3))
    x_mean = 2.0 * x_dots / scale - 1.0
    y_mean = 2.0 * y_dots / scale - 1.0
    coord = jnp.stack([y_mean, x_mean], axis=2)
    lin_h = jnp.linspace(-1.0, 1.0, out_h)[None, None, :, None]
    lin_w = jnp.linspace(-1.0, 1.0, out_w)[None, None, None, :]
    dist = (lin_h - x_mean[..., None, None]) ** 2 + (lin_w - y_mean[..., None, None]) ** 2
    res = jnp.exp(-jnp.sqrt(dist + 1e-6) / (2.0 * std * std))
    max_val = jnp.max(res[0], axis=(1, 2))
    return res, coord, max_val


# ----------------------------------------------------------------------------- main
if __name__ == "__main__":
    key = jax.random.PRNGKey(0)
    x = jax.random.normal(key, (2, 4, 16, 16), jnp.float32)   # B=2, C=4, 16x16 feature map

    std, output_size = 0.1, (16, 16)
    fwd = jax.jit(functools.partial(heatmap_forward, std=std, output_size=output_size))
    res, coord, max_val = fwd(x)
    jax.block_until_ready((res, coord, max_val))

    assert res.shape == (2, 4, 16, 16), res.shape
    assert coord.shape == (2, 4, 2), coord.shape
    assert max_val.shape == (4,), max_val.shape
    assert bool(jnp.all(jnp.isfinite(res)))
    assert bool(jnp.all(jnp.isfinite(coord)))
    assert bool(jnp.all(jnp.isfinite(max_val)))

    # Numerical check vs. the pure-JAX reference.  coord is exact to ~1e-5 (bf16x2 matmul
    # + f32 accumulation); res amplifies coord error by ~1/(2*std^2)=50 inside the exp,
    # hence the wider (still conservative) tolerance there.
    r_res, r_coord, r_max = _heatmap_ref(x, std=std, out_h=16, out_w=16)
    assert bool(jnp.allclose(coord, r_coord, atol=1e-3, rtol=1e-3))
    assert bool(jnp.allclose(res, r_res, atol=2e-2, rtol=2e-2))
    assert bool(jnp.allclose(max_val, r_max, atol=2e-2, rtol=2e-2))

    print("KERNEL_OK")
</pallas_src>

<mosaic_0001>
module attributes {stable_mosaic.version = 11 : i64} {
  func.func @_heatmap_kernel(%arg0: i32, %arg1: memref<8x256xf32, #tpu.memory_space<vmem>>, %arg2: memref<256x128xbf16, #tpu.memory_space<vmem>>, %arg3: memref<2x256xf32, #tpu.memory_space<vmem>>, %arg4: memref<8x256xf32, #tpu.memory_space<vmem>>, %arg5: memref<8x128xf32, #tpu.memory_space<vmem>>) attributes {dimension_semantics = [#tpu.dimension_semantics<parallel>], iteration_bounds = array<i64: 1>, scalar_prefetch = 0 : i64, scratch_operands = 0 : i64, tpu.core_type = #tpu.core_type<tc>, window_params = [{transform_indices = @transform_0, window_bounds = array<i64: 8, 256>}, {pipeline_mode = #tpu.pipeline_mode<synchronous>, transform_indices = @transform_1, window_bounds = array<i64: 256, 128>}, {pipeline_mode = #tpu.pipeline_mode<synchronous>, transform_indices = @transform_2, window_bounds = array<i64: 2, 256>}, {transform_indices = @transform_3, window_bounds = array<i64: 8, 256>}, {transform_indices = @transform_4, window_bounds = array<i64: 8, 128>}]} {
    %c0 = arith.constant 0 : index
    %c0_0 = arith.constant 0 : index
    %0 = vector.load %arg1[%c0, %c0_0] : memref<8x256xf32, #tpu.memory_space<vmem>>, vector<8x256xf32>
    %cst = arith.constant dense<0xFF800000> : vector<8xf32>
    %1 = vector.multi_reduction <maximumf>, %0, %cst [1] : vector<8x256xf32> to vector<8xf32>
    %2 = vector.shape_cast %1 : vector<8xf32> to vector<8x1xf32>
    %3 = vector.broadcast %2 : vector<8x1xf32> to vector<8x256xf32>
    %4 = arith.subf %0, %3 : vector<8x256xf32>
    %5 = math.exp %4 : vector<8x256xf32>
    %6 = arith.truncf %5 : vector<8x256xf32> to vector<8x256xbf16>
    %7 = arith.extf %6 : vector<8x256xbf16> to vector<8x256xf32>
    %8 = arith.subf %5, %7 : vector<8x256xf32>
    %9 = arith.truncf %8 : vector<8x256xf32> to vector<8x256xbf16>
    %c0_1 = arith.constant 0 : index
    %c0_2 = arith.constant 0 : index
    %10 = vector.load %arg2[%c0_1, %c0_2] : memref<256x128xbf16, #tpu.memory_space<vmem>>, vector<256x128xbf16>
    %cst_3 = arith.constant dense<0.000000e+00> : vector<8x128xf32>
    %11 = tpu.matmul %6, %10, %cst_3 {dimension_numbers = #tpu.dot_dimension_numbers<[1], [0], [0], [1], [0, 0, 1, 1], [], []>} : vector<8x256xbf16>, vector<256x128xbf16>, vector<8x128xf32> -> vector<8x128xf32>
    %cst_4 = arith.constant dense<0.000000e+00> : vector<8x128xf32>
    %12 = tpu.matmul %9, %10, %cst_4 {dimension_numbers = #tpu.dot_dimension_numbers<[1], [0], [0], [1], [0, 0, 1, 1], [], []>} : vector<8x256xbf16>, vector<256x128xbf16>, vector<8x128xf32> -> vector<8x128xf32>
    %13 = arith.addf %11, %12 : vector<8x128xf32>
    %14 = vector.extract_strided_slice %13 {offsets = [0, 2], sizes = [8, 1], strides = [1, 1]} : vector<8x128xf32> to vector<8x1xf32>
    %cst_5 = arith.constant 1.000000e+00 : f32
    %15 = vector.broadcast %cst_5 : f32 to vector<8x1xf32>
    %16 = arith.divf %15, %14 : vector<8x1xf32>
    %cst_6 = arith.constant 1.250000e-01 : f32
    %17 = vector.broadcast %cst_6 : f32 to vector<8x1xf32>
    %18 = arith.mulf %17, %16 : vector<8x1xf32>
    %19 = vector.broadcast %18 : vector<8x1xf32> to vector<8x128xf32>
    %20 = arith.mulf %13, %19 : vector<8x128xf32>
    %cst_7 = arith.constant 1.000000e+00 : f32
    %21 = vector.broadcast %cst_7 : f32 to vector<8x128xf32>
    %22 = arith.subf %20, %21 : vector<8x128xf32>
    %23 = vector.extract_strided_slice %22 {offsets = [0, 0], sizes = [8, 1], strides = [1, 1]} : vector<8x128xf32> to vector<8x1xf32>
    %24 = vector.extract_strided_slice %22 {offsets = [0, 1], sizes = [8, 1], strides = [1, 1]} : vector<8x128xf32> to vector<8x1xf32>
    %c0_8 = arith.constant 0 : index
    %c0_9 = arith.constant 0 : index
    %25 = vector.load %arg3[%c0_8, %c0_9] : memref<2x256xf32, #tpu.memory_space<vmem>>, vector<2x256xf32>
    %26 = vector.extract_strided_slice %25 {offsets = [0, 0], sizes = [1, 256], strides = [1, 1]} : vector<2x256xf32> to vector<1x256xf32>
    %27 = vector.extract_strided_slice %25 {offsets = [1, 0], sizes = [1, 256], strides = [1, 1]} : vector<2x256xf32> to vector<1x256xf32>
    %28 = vector.broadcast %26 : vector<1x256xf32> to vector<8x256xf32>
    %29 = vector.broadcast %24 : vector<8x1xf32> to vector<8x256xf32>
    %30 = arith.subf %28, %29 : vector<8x256xf32>
    %31 = arith.mulf %30, %30 : vector<8x256xf32>
    %32 = vector.broadcast %27 : vector<1x256xf32> to vector<8x256xf32>
    %33 = vector.broadcast %23 : vector<8x1xf32> to vector<8x256xf32>
    %34 = arith.subf %32, %33 : vector<8x256xf32>
    %35 = arith.mulf %34, %34 : vector<8x256xf32>
    %36 = arith.addf %31, %35 : vector<8x256xf32>
    %cst_10 = arith.constant 9.99999997E-7 : f32
    %37 = vector.broadcast %cst_10 : f32 to vector<8x256xf32>
    %38 = arith.addf %36, %37 : vector<8x256xf32>
    %39 = math.sqrt %38 : vector<8x256xf32>
    %cst_11 = arith.constant 0.000000e+00 : f32
    %40 = vector.broadcast %cst_11 : f32 to vector<8x256xf32>
    %41 = arith.subf %40, %39 : vector<8x256xf32>
    %cst_12 = arith.constant 5.000000e+01 : f32
    %42 = vector.broadcast %cst_12 : f32 to vector<8x256xf32>
    %43 = arith.mulf %41, %42 : vector<8x256xf32>
    %44 = math.exp %43 : vector<8x256xf32>
    %c0_13 = arith.constant 0 : index
    %c0_14 = arith.constant 0 : index
    %45 = vector.load %arg4[%c0_13, %c0_14] : memref<8x256xf32, #tpu.memory_space<vmem>>, vector<8x256xf32>
    tpu.vector_store %arg4[%c0_13, %c0_14], %44 {strides = array<i32>} : memref<8x256xf32, #tpu.memory_space<vmem>>, vector<8x256xf32>,
    %46 = tpu.iota {dimensions = array<i32: 1>} : vector<8x128xi32>
    %c2_i32 = arith.constant 2 : i32
    %47 = vector.broadcast %c2_i32 : i32 to vector<8x128xi32>
    %48 = arith.cmpi slt, %46, %47 : vector<8x128xi32>
    %cst_15 = arith.constant 0.000000e+00 : f32
    %49 = vector.broadcast %cst_15 : f32 to vector<8x128xf32>
    %50 = arith.select %48, %22, %49 : vector<8x128xi1>, vector<8x128xf32>
    %c1_i32 = arith.constant 1 : i32
    %51 = arith.cmpi slt, %arg0, %c1_i32 : i32
    %52 = arith.extui %51 : i1 to i32
    %c0_i32 = arith.constant 0 : i32
    %53 = arith.cmpi ne, %52, %c0_i32 : i32
    scf.if %53 {
      %cst_18 = arith.constant dense<0xFF800000> : vector<8xf32>
      %57 = vector.multi_reduction <maximumf>, %44, %cst_18 [1] : vector<8x256xf32> to vector<8xf32>
      %58 = vector.shape_cast %57 : vector<8xf32> to vector<8x1xf32>
      %c2_i32_19 = arith.constant 2 : i32
      %59 = vector.broadcast %c2_i32_19 : i32 to vector<8x128xi32>
      %60 = arith.cmpi eq, %46, %59 : vector<8x128xi32>
      %61 = vector.shape_cast %58 : vector<8x1xf32> to vector<8x1xf32>
      %62 = vector.broadcast %61 : vector<8x1xf32> to vector<8x128xf32>
      %63 = arith.select %60, %62, %50 : vector<8x128xi1>, vector<8x128xf32>
      %c0_20 = arith.constant 0 : index
      %c0_21 = arith.constant 0 : index
      %64 = vector.load %arg5[%c0_20, %c0_21] : memref<8x128xf32, #tpu.memory_space<vmem>>, vector<8x128xf32>
      tpu.vector_store %arg5[%c0_20, %c0_21], %63 {strides = array<i32>} : memref<8x128xf32, #tpu.memory_space<vmem>>, vector<8x128xf32>,
    } else {
    }
    %c1_i32_16 = arith.constant 1 : i32
    %54 = arith.cmpi sge, %arg0, %c1_i32_16 : i32
    %55 = arith.extui %54 : i1 to i32
    %c0_i32_17 = arith.constant 0 : i32
    %56 = arith.cmpi ne, %55, %c0_i32_17 : i32
    scf.if %56 {
      %c0_18 = arith.constant 0 : index
      %c0_19 = arith.constant 0 : index
      %57 = vector.load %arg5[%c0_18, %c0_19] : memref<8x128xf32, #tpu.memory_space<vmem>>, vector<8x128xf32>
      tpu.vector_store %arg5[%c0_18, %c0_19], %50 {strides = array<i32>} : memref<8x128xf32, #tpu.memory_space<vmem>>, vector<8x128xf32>,
    } else {
    }
    return
  }
  func.func @transform_0(%arg0: i32) -> (i32, i32) {
    %c0_i32 = arith.constant 0 : i32
    %c0_i32_0 = arith.constant 0 : i32
    return %arg0, %c0_i32 : i32, i32
  }
  func.func @transform_1(%arg0: i32) -> (i32, i32) {
    %c0_i32 = arith.constant 0 : i32
    %c0_i32_0 = arith.constant 0 : i32
    %c0_i32_1 = arith.constant 0 : i32
    return %c0_i32, %c0_i32_0 : i32, i32
  }
  func.func @transform_2(%arg0: i32) -> (i32, i32) {
    %c0_i32 = arith.constant 0 : i32
    %c0_i32_0 = arith.constant 0 : i32
    %c0_i32_1 = arith.constant 0 : i32
    return %c0_i32, %c0_i32_0 : i32, i32
  }
  func.func @transform_3(%arg0: i32) -> (i32, i32) {
    %c0_i32 = arith.constant 0 : i32
    %c0_i32_0 = arith.constant 0 : i32
    return %arg0, %c0_i32 : i32, i32
  }
  func.func @transform_4(%arg0: i32) -> (i32, i32) {
    %c0_i32 = arith.constant 0 : i32
    %c0_i32_0 = arith.constant 0 : i32
    return %arg0, %c0_i32 : i32, i32
  }
}

</mosaic_0001>

<bundles_post_ra>
// kernel: heatmap_forward.1
= control target key start
LH: loop header
LB: loop body
LE: loop exit
PB: predicated region body
PF: predicated region fallthrough
CT: control target
= control target key end

     0   :  { %v462_v34 = vmov 2   ;;  %v463_v48 = vmov 1   ;;  %v464_v49 = vmov 0   ;;  %v256_v50 = vlaneseq  ;;  %s563_s0 = inlined_call_operand.vmem [shape: f32[8,256], index: 0, kind: input, shape index: {}]   ;;  %s564_s1 = inlined_call_operand.vmem [shape: bf16[256,128], index: 1, kind: input, shape index: {}]   ;;  %s565_s2 = inlined_call_operand.vmem [shape: f32[2,256], index: 2, kind: input, shape index: {}]   ;;  %s566_s3 = inlined_call_operand.vmem [shape: f32[8,256], index: 3, kind: output, shape index: {0}]   ;;  %s567_s4 = inlined_call_operand.vmem [shape: f32[8,128], index: 4, kind: output, shape index: {1}]  }
   0x1   :  { %v17_v0 = vld [vmem:[%s563_s0] sm:$0xff]  ;;  %v18_v1 = vld [vmem:[%s563_s0 + $0x8] sm:$0xff]  ;;  %v436_v7 = vld [vmem:[%s564_s1 + $0x50] sm:$0xff]   ;;  %428 = vset.pattern.permute.xlu0 %v462_v34  ;;  %429 = vset.pattern.permute.xlu1 %v463_v48 }
   0x2   :  { %v19_v2 = vmax.f32 %v17_v0, %v18_v1  ;;  %v432_v3 = vld [vmem:[%s564_s1 + $0x40] sm:$0xff]   ;;  %v434_v5 = vld [vmem:[%s564_s1 + $0x48] sm:$0xff]   ;;  %v437_v8 = vld [vmem:[%s564_s1 + $0x10] sm:$0xff]   ;;  %v544_v51 = vand.u32 127, %v256_v50  ;;  %v257_v56 = vshrl.u32 %v256_v50, 7 }
   0x3   :  { %v433_v4 = vld [vmem:[%s564_s1] sm:$0xff]   ;;  %403 = vmatprep.subr.bf16.mxu1 %v432_v3  ;;  %v435_v6 = vld [vmem:[%s564_s1 + $0x8] sm:$0xff]   ;;  %381 = vmatprep.subr.bf16.mxu0 %v432_v3  ;;  %v438_v9 = vld [vmem:[%s564_s1 + $0x58] sm:$0xff]  }
   0x4   :  { %20 = vmax.xlane.f32.xlu0 %v19_v2  ;;  %404 = vmatpush3.bf16.msra.mxu1 %v433_v4  ;;  %v439_v10 = vld [vmem:[%s564_s1 + $0x18] sm:$0xff]   ;;  %v440_v11 = vld [vmem:[%s564_s1 + $0x60] sm:$0xff]   ;;  %v442_v13 = vld [vmem:[%s564_s1 + $0x68] sm:$0xff]   ;;  %vm339_vm0 = vcmp.lt.s32.totalorder %v544_v51, 2  ;;  %v258_v57 = vsub.s32 0, %v257_v56  ;;  %v262_v58 = vsub.s32 2, %v257_v56 }
   0x5   :  { %405 = vmatprep.subr.bf16.mxu1 %v434_v5  ;;  %382 = vmatpush3.bf16.msra.mxu0 %v433_v4  ;;  %v441_v12 = vld [vmem:[%s564_s1 + $0x20] sm:$0xff]   ;;  %v443_v14 = vld [vmem:[%s564_s1 + $0x28] sm:$0xff]   ;;  %v444_v15 = vld [vmem:[%s564_s1 + $0x70] sm:$0xff]   ;;  %v285_v60 = vsub.s32 1, %v257_v56  ;;  %v289_v61 = vsub.s32 3, %v257_v56  ;;  %vm348_vm5 = vcmp.eq.s32.totalorder %v544_v51, 2 }
   0x6   :  { %383 = vmatprep.subr.bf16.mxu0 %v434_v5  ;;  %v445_v16 = vld [vmem:[%s564_s1 + $0x30] sm:$0xff]   ;;  %v446_v17 = vld [vmem:[%s564_s1 + $0x78] sm:$0xff]   ;;  %v254_v59 = vld [vmem:[%s565_s2] sm:$0xf] }
   0x7   :  { %v447_v18 = vld [vmem:[%s564_s1 + $0x38] sm:$0xff]   ;;  %v259_v62 = vrot.slane %v254_v59, %v258_v57  ;;  %v263_v63 = vrot.slane %v254_v59, %v262_v58 }
   0x8   :  { %406 = vmatpush3.bf16.msra.mxu1 %v435_v6 }
   0x9   :  { %407 = vmatprep.subr.bf16.mxu1 %v436_v7  ;;  %384 = vmatpush3.bf16.msra.mxu0 %v435_v6  ;;  %v269_v2 = vrot.slane %v259_v62, %v258_v57  ;;  %v273_v3 = vrot.slane %v263_v63, %v258_v57 }
   0xa   :  { %385 = vmatprep.subr.bf16.mxu0 %v436_v7 }
   0xc   :  { %408 = vmatpush3.bf16.msra.mxu1 %v437_v8 }
   0xd   :  { %409 = vmatprep.subr.bf16.mxu1 %v438_v9  ;;  %386 = vmatpush3.bf16.msra.mxu0 %v437_v8 }
   0xe   :  { %387 = vmatprep.subr.bf16.mxu0 %v438_v9 }
  0x10   :  { %410 = vmatpush3.bf16.msra.mxu1 %v439_v10 }
  0x11   :  { %388 = vmatpush3.bf16.msra.mxu0 %v439_v10  ;;  %411 = vmatprep.subr.bf16.mxu1 %v440_v11 }
  0x12   :  { %389 = vmatprep.subr.bf16.mxu0 %v440_v11 }
  0x14   :  { %412 = vmatpush3.bf16.msra.mxu1 %v441_v12 }
  0x15   :  { %390 = vmatpush3.bf16.msra.mxu0 %v441_v12  ;;  %413 = vmatprep.subr.bf16.mxu1 %v442_v13 }
  0x16   :  { %391 = vmatprep.subr.bf16.mxu0 %v442_v13 }
  0x18   :  { %414 = vmatpush3.bf16.msra.mxu1 %v443_v14 }
  0x19   :  { %392 = vmatpush3.bf16.msra.mxu0 %v443_v14  ;;  %415 = vmatprep.subr.bf16.mxu1 %v444_v15 }
  0x1a   :  { %393 = vmatprep.subr.bf16.mxu0 %v444_v15 }
  0x1c   :  { %416 = vmatpush3.bf16.msra.mxu1 %v445_v16 }
  0x1d   :  { %394 = vmatpush3.bf16.msra.mxu0 %v445_v16  ;;  %417 = vmatprep.subr.bf16.mxu1 %v446_v17 }
  0x1e   :  { %395 = vmatprep.subr.bf16.mxu0 %v446_v17 }
  0x20   :  { %418 = vmatpush3.bf16.msra.mxu1 %v447_v18 }
  0x21   :  { %396 = vmatpush3.bf16.msra.mxu0 %v447_v18 }
  0x91   :  { %v21_v19 = vpop.xlane.xlu0 %20 }
  0x92   :  { %v22_v20 = vsub.f32 %v17_v0, %v21_v19  ;;  %v23_v21 = vsub.f32 %v18_v1, %v21_v19  ;;  %v286_v0 = vrot.slane %v254_v59, %v285_v60  ;;  %v290_v1 = vrot.slane %v254_v59, %v289_v61 }
  0x94   :  { %v24_v22 = vmul.f32 1.442695, %v22_v20  ;;  %v26_v23 = vmul.f32 1.442695, %v23_v21  ;;  %v296_v5 = vrot.slane %v286_v0, %v285_v60  ;;  %v300_v6 = vrot.slane %v290_v1, %v285_v60 }
  0x96   :  { %448 = vpow2.f32 %v24_v22 }
  0x97   :  { %450 = vpow2.f32 %v26_v23 }
  0xa0   :  { %v449_v24 = vpop.eup %448 }
  0xa1   :  { %v451_v25 = vpop.eup %450  ;;  %v28_v26 = vpack.c.bf16 %v449_v24, %v449_v24 }
  0xa2   :  { %v29_v27 = vpack.c.bf16 %v451_v25, %v451_v25 }
  0xa3   :  { %v30_v28 = vunpack.c.l.bf16 %v28_v26 }
  0xa4   :  { %236 = vmatprep.mubr.bf16.mxu1 %v29_v27  ;;  %v31_v29 = vunpack.c.l.bf16 %v29_v27 }
  0xa5   :  { %237 = vmatmul.mubr.bf16.vlgmr.msra.gmra.mrb[0].mxu1 %v28_v26  ;;  %v32_v30 = vsub.f32 %v449_v24, %v30_v28 }
  0xa6   :  { %v33_v31 = vsub.f32 %v451_v25, %v31_v29 }
  0xa7   :  { %v34_v32 = vpack.c.bf16 %v32_v30, %v32_v30 }
  0xa8   :  { %v35_v33 = vpack.c.bf16 %v33_v31, %v33_v31 }
  0xaa   :  { %196 = vmatprep.mubr.bf16.mxu0 %v35_v33 }
  0xab   :  { %197 = vmatmul.mubr.bf16.vlgmr.msra.gmra.mrb[0].mxu0 %v34_v32 }
 0x178   :  { %v419_v35 = vpop.f32.mrb[0].mxu1 }
 0x179   :  { %v420_v36 = vpop.f32.mrb[1].mxu1 }
 0x17a   :  { %v421_v37 = vadd.f32 %v420_v36, %v419_v35  ;;  %v422_v38 = vpop.f32.mrb[2].mxu1 }
 0x17b   :  { %v423_v39 = vpop.f32.mrb[3].mxu1 }
 0x17e   :  { %v397_v40 = vpop.f32.mrb[0].mxu0 }
 0x17f   :  { %v398_v41 = vpop.f32.mrb[1].mxu0 }
 0x180   :  { %v399_v42 = vadd.f32 %v398_v41, %v397_v40  ;;  %v400_v43 = vpop.f32.mrb[2].mxu0 }
 0x181   :  { %v401_v44 = vpop.f32.mrb[3].mxu0 }
 0x182   :  { %v239_v45 = vadd.f32 %v421_v37, %v399_v42 }
 0x184   :  { %452 = vrcp.f32 %v239_v45 }
 0x18e   :  { %v453_v46 = vpop.eup %452 }
 0x18f   :  { %v246_v47 = vmul.f32 0.125, %v453_v46 }
 0x191   :  { %249 = vperm.xlu0 %428, %v246_v47  }
 0x195   :  { %431 = vset.pattern.permute.xlu0 %v464_v49 }
 0x210   :  { %v250_v52 = vpop.permute.xlu0 %249 }
 0x211   :  { %v252_v53 = vmul.f32 %v250_v52, %v239_v45 }
 0x213   :  { %v380_v54 = vadd.f32 -1.0, %v252_v53 }
 0x215   :  { %276 = vperm.xlu1 %429, %v380_v54   ;;  %v547_v55 = vsel %vm339_vm0, %v380_v54, 0.0 }
 0x219   :  { %430 = vset.pattern.permute.xlu1 %v464_v49 }
 0x21a   :  { %302 = vperm.xlu1 %430, %v380_v54  }
 0x294   :  { %v277_v4 = vpop.permute.xlu1 %276 }
 0x295   :  { %v279_v7 = vsub.f32 %v269_v2, %v277_v4  ;;  %v280_v8 = vsub.f32 %v273_v3, %v277_v4 }
 0x297   :  { %v281_v12 = vmul.f32 %v279_v7, %v279_v7  ;;  %v282_v13 = vmul.f32 %v280_v8, %v280_v8 }
 0x299   :  { %v303_v9 = vpop.permute.xlu1 %302 }
 0x29a   :  { %v305_v10 = vsub.f32 %v296_v5, %v303_v9  ;;  %v306_v11 = vsub.f32 %v300_v6, %v303_v9 }
 0x29c   :  { %v307_v14 = vmul.f32 %v305_v10, %v305_v10  ;;  %v308_v15 = vmul.f32 %v306_v11, %v306_v11 }
 0x29e   :  { %v309_v16 = vadd.f32 %v307_v14, %v281_v12  ;;  %v310_v17 = vadd.f32 %v308_v15, %v282_v13 }
 0x2a0   :  { %v311_v18 = vadd.f32 1e-06, %v309_v16  ;;  %v312_v19 = vadd.f32 1e-06, %v310_v17 }
 0x2a2   :  { %454 = vrsqrt.f32 %v311_v18  ;;  %vm315_vm1 = vcmp.eq.f32.partialorder %v311_v18, inf  ;;  %v318_v23 = vand.u32 2147483648, %v311_v18  ;;  %vm317_vm2 = vcmp.eq.f32.partialorder %v311_v18, 0.0 }
 0x2a3   :  { %456 = vrsqrt.f32 %v312_v19  ;;  %vm322_vm3 = vcmp.eq.f32.partialorder %v312_v19, inf  ;;  %v325_v26 = vand.u32 2147483648, %v312_v19  ;;  %vm324_vm4 = vcmp.eq.f32.partialorder %v312_v19, 0.0 }
 0x2ac   :  { %v455_v20 = vpop.eup %454 }
 0x2ad   :  { %v457_v21 = vpop.eup %456  ;;  %v314_v22 = vmul.f32 %v455_v20, %v311_v18 }
 0x2ae   :  { %v321_v24 = vmul.f32 %v457_v21, %v312_v19 }
 0x2af   :  { %v316_v25 = vsel %vm315_vm1, %v311_v18, %v314_v22 }
 0x2b0   :  { %v319_v27 = vsel %vm317_vm2, %v318_v23, %v316_v25  ;;  %v323_v28 = vsel %vm322_vm3, %v312_v19, %v321_v24 }
 0x2b1   :  { %v326_v29 = vsel %vm324_vm4, %v325_v26, %v323_v28  ;;  %v327_v30 = vsub.f32 0.0, %v319_v27 }
 0x2b2   :  { %v328_v31 = vsub.f32 0.0, %v326_v29 }
 0x2b3   :  { %v329_v32 = vmul.f32 50.0, %v327_v30 }
 0x2b4   :  { %v330_v33 = vmul.f32 50.0, %v328_v31 }
 0x2b5   :  { %v331_v34 = vmul.f32 1.442695, %v329_v32 }
 0x2b6   :  { %v333_v35 = vmul.f32 1.442695, %v330_v33 }
 0x2b7   :  { %458 = vpow2.f32 %v331_v34 }
 0x2b8   :  { %460 = vpow2.f32 %v333_v35 }
 0x2c1   :  { %v459_v36 = vpop.eup %458 }
 0x2c2   :  { %v461_v37 = vpop.eup %460  ;;  %335 = vst [vmem:[%s566_s3] sm:$0xff] %v459_v36 }
 0x2c3   :  { %336 = vst [vmem:[%s566_s3 + $0x8] sm:$0xff] %v461_v37  ;;  %v345_v38 = vmax.f32 %v459_v36, %v461_v37 }
 0x2c5   :  { %346 = vmax.xlane.f32.xlu1 %v345_v38 }
 0x352   :  { %v347_v39 = vpop.xlane.xlu1 %346 }
 0x353   :  { %v349_v40 = vsel %vm348_vm5, %v347_v39, %v547_v55 }
 0x354   :  { %350 = vst [vmem:[%s567_s4] sm:$0xff] %v349_v40 }

</bundles_post_ra>
